<compile_context>
chip_gen: v7x
topology: tpu7x:2x2x1
jax: 0.10.0
libtpu: 0.0.40
codegen_flags: <defaults>
</compile_context>

<pallas_src>
import jax
import jax.numpy as jnp
from jax import lax
from jax.experimental import pallas as pl
from jax.experimental.pallas import tpu as pltpu


def _make_shift_kernel(TB, T, BC, FHW, direction):
    """Per-block kernel. Block = (TB, T, BC); all arguments are compile-time."""
    two_fhw = 2 * FHW

    def _left(x):  # x: (T, BC) -> shifted left along T, zero-fill last row
        if T == 1:
            return jnp.zeros_like(x)
        return jnp.concatenate([x[1:], jnp.zeros((1, BC), x.dtype)], axis=0)

    def _right(x):  # shifted right along T, zero-fill first row
        if T == 1:
            return jnp.zeros_like(x)
        return jnp.concatenate([jnp.zeros((1, BC), x.dtype), x[:-1]], axis=0)

    def kernel(x_ref, o_ref):
        col0 = pl.program_id(1) * BC  # global first column of this block

        def write_all(fn):
            # TB is a small compile-time constant -> cheap unrolled loop of
            # 2-D (T, BC) slab ops (keeps sublane concat in its simplest form).
            for t in range(TB):
                o_ref[t] = fn(x_ref[t])

        if direction in ('left', 'right'):
            shift = _left if direction == 'left' else _right
            in_shift = col0 + BC <= FHW      # block entirely inside fold span
            in_copy = col0 >= FHW            # block entirely in copy-through

            @pl.when(in_shift)
            def _():
                write_all(shift)

            @pl.when(in_copy)
            def _():
                write_all(lambda xb: xb)

            @pl.when(jnp.logical_not(jnp.logical_or(in_shift, in_copy)))
            def _():
                col = col0 + lax.broadcasted_iota(jnp.int32, (1, BC), 1)
                mask = col < FHW
                write_all(lambda xb: jnp.where(mask, shift(xb), xb))
        else:
            # bidirectional: [0, FHW) left, [FHW, 2*FHW) right, rest copy.
            in_l = col0 + BC <= FHW
            in_r = jnp.logical_and(col0 >= FHW, col0 + BC <= two_fhw)
            in_c = col0 >= two_fhw
            straddle = jnp.logical_not(
                jnp.logical_or(jnp.logical_or(in_l, in_r), in_c))

            @pl.when(in_l)
            def _():
                write_all(_left)

            @pl.when(in_r)
            def _():
                write_all(_right)

            @pl.when(in_c)
            def _():
                write_all(lambda xb: xb)

            @pl.when(straddle)
            def _():
                col = col0 + lax.broadcasted_iota(jnp.int32, (1, BC), 1)
                m_l = col < FHW
                m_r = col < two_fhw
                write_all(lambda xb: jnp.where(
                    m_l, _left(xb), jnp.where(m_r, _right(xb), xb)))

    return kernel


def temporal_shift(x, n_segment=4, fold_div=8, direction='left', split=False,
                   *, donate=False, target_block_bytes=2 << 20):
    """Pallas TemporalShift forward. x: (bz, nt, h, w), nt % n_segment == 0.

    donate=True: alias the output to the input buffer and only touch the
    shifted column span (~1/fold_div of the tensor). Intended to be called on
    a value whose buffer may be consumed (e.g. an intermediate inside jit).
    """
    if split:
        # TODO(synk): split=True (return only the first 2*fold channels per
        # segment, reshaped) is not implemented in the Pallas path.
        raise NotImplementedError("split=True is not supported")

    bz, nt, h, w = x.shape
    assert nt % n_segment == 0, "nt must be divisible by n_segment"
    T = n_segment
    c = nt // T
    fold = c // fold_div
    hw = h * w
    CHW = c * hw
    FHW = fold * hw
    itemsize = jnp.dtype(x.dtype).itemsize

    if fold == 0:
        # Nothing is shifted -> the op is the identity.
        return x

    # Free, row-major view: (bz, nt, h, w) -> (bz, T, c*h*w).
    x3 = x.reshape(bz, T, CHW)

    # --- lane (column) tiling -------------------------------------------------
    # Budget per-buffer VMEM using the *padded* sublane count (T is padded to
    # 8/16/32 rows for 4/2/1-byte dtypes in VMEM tiles).
    sub = 8 * max(1, 4 // itemsize)
    padded_T = -(-T // sub) * sub
    bc = max(128, (target_block_bytes // (padded_T * itemsize)) // 128 * 128)
    if CHW % 128 == 0:
        BC = int(min(bc, CHW))
    elif CHW > 128:
        BC = int(min(bc, (CHW // 128) * 128))   # ragged last block; OOB writes dropped
    else:
        BC = CHW                                # short full-extent last dim

    # Donated/aliased path only needs to visit the shifted column span.
    span = FHW if direction in ('left', 'right') else 2 * FHW
    span = min(span, CHW)
    if donate and CHW > 128:
        BC = int(min(BC, max(128, -(-span // 128) * 128)))
    ncol = pl.cdiv(span, BC) if donate else pl.cdiv(CHW, BC)

    # --- batch folding for tiny blocks (avoid per-grid-step-overhead regime) --
    buffer_bytes = padded_T * BC * itemsize
    TB = int(min(bz, 8, max(1, target_block_bytes // max(1, buffer_bytes))))
    nb = pl.cdiv(bz, TB)
    if nb * ncol < 2 and bz > 1:     # keep >=2 grid steps for megacore sharding
        TB = pl.cdiv(bz, 2)
        nb = pl.cdiv(bz, TB)
    grid = (nb, ncol)

    kernel = _make_shift_kernel(TB, T, BC, FHW, direction)

    # VMEM budget: 2 (in+out) x 2 (double buffer) x padded block.
    vmem_needed = 4 * TB * padded_T * BC * itemsize
    compiler_kwargs = dict(dimension_semantics=("parallel", "parallel"))
    if vmem_needed > (12 << 20):
        compiler_kwargs["vmem_limit_bytes"] = int(vmem_needed + (4 << 20))

    bytes_accessed = 2 * bz * T * min(ncol * BC, CHW) * itemsize

    call_kwargs = {}
    if donate:
        call_kwargs["input_output_aliases"] = {0: 0}

    out3 = pl.pallas_call(
        kernel,
        out_shape=jax.ShapeDtypeStruct((bz, T, CHW), x.dtype),
        grid_spec=pltpu.PrefetchScalarGridSpec(
            num_scalar_prefetch=0,
            grid=grid,
            in_specs=[pl.BlockSpec((TB, T, BC), lambda b, j: (b, 0, j))],
            out_specs=pl.BlockSpec((TB, T, BC), lambda b, j: (b, 0, j)),
        ),
        compiler_params=pltpu.CompilerParams(**compiler_kwargs),
        cost_estimate=pl.CostEstimate(flops=0, transcendentals=0,
                                      bytes_accessed=int(bytes_accessed)),
        **call_kwargs,
    )(x3)

    # Free view back to the original layout.
    return out3.reshape(bz, nt, h, w)


def temporal_shift_reference(x, n_segment=4, fold_div=8, direction='left'):
    """Pure-JAX mirror of the PyTorch TemporalShift.shift (split=False)."""
    bz, nt, h, w = x.shape
    c = nt // n_segment
    x5 = x.reshape(bz, n_segment, c, h, w)
    fold = c // fold_div
    out = jnp.zeros_like(x5)
    if direction == 'left':
        out = out.at[:, :-1, :fold].set(x5[:, 1:, :fold])
        out = out.at[:, :, fold:].set(x5[:, :, fold:])
    elif direction == 'right':
        out = out.at[:, 1:, :fold].set(x5[:, :-1, :fold])
        out = out.at[:, :, fold:].set(x5[:, :, fold:])
    else:
        out = out.at[:, :-1, :fold].set(x5[:, 1:, :fold])
        out = out.at[:, 1:, fold:2 * fold].set(x5[:, :-1, fold:2 * fold])
        out = out.at[:, :, 2 * fold:].set(x5[:, :, 2 * fold:])
    return out.reshape(bz, nt, h, w)


if __name__ == "__main__":
    key = jax.random.PRNGKey(0)

    def check(x, n_segment=4, fold_div=8, direction='left', **kw):
        out = jax.block_until_ready(
            temporal_shift(x, n_segment=n_segment, fold_div=fold_div,
                           direction=direction, **kw))
        ref = temporal_shift_reference(x, n_segment=n_segment,
                                       fold_div=fold_div, direction=direction)
        assert out.shape == x.shape and out.dtype == x.dtype
        assert bool(jnp.array_equal(out, ref)), f"mismatch: dir={direction} kw={kw}"

    # 1) Module defaults: bz=2, c=8 channels per segment (fold=1), nt=32, 16x16.
    bz, n_segment, c, h, w = 2, 4, 8, 16, 16
    nt = n_segment * c
    x = jax.random.normal(key, (bz, nt, h, w), dtype=jnp.float32)
    check(x)

    # 2) Force multi-block columns -> exercises pure-shift / pure-copy branches.
    check(x, target_block_bytes=2048)

    # 3) Fold boundary straddling a block + all directions (FHW=144, BC=128).
    x12 = jax.random.normal(jax.random.PRNGKey(1), (2, nt, 12, 12), jnp.float32)
    for d in ('left', 'right', 'none'):
        check(x12, direction=d, target_block_bytes=2048)

    # 4) Non-128-aligned CHW (h=w=5 -> CHW=200) -> ragged last column block.
    x5 = jax.random.normal(jax.random.PRNGKey(2), (2, nt, 5, 5), jnp.float32)
    check(x5)

    # 5) bf16 dtype (dtype-preserving I/O, no f32 round-trip).
    check(x.astype(jnp.bfloat16))

    # 6) Donated / aliased fold-only path (~fold_div x less HBM traffic).
    ref = temporal_shift_reference(x, n_segment=n_segment, fold_div=8,
                                   direction='left')
    f = jax.jit(lambda v: temporal_shift(v + 0.0, n_segment=n_segment,
                                         fold_div=8, direction='left',
                                         donate=True))
    out_d = jax.block_until_ready(f(x))
    assert out_d.shape == x.shape and out_d.dtype == x.dtype
    assert bool(jnp.array_equal(out_d, ref)), "mismatch: donated path"

    print("KERNEL_OK")
</pallas_src>

<mosaic_0001>
module attributes {stable_mosaic.version = 11 : i64} {
  func.func @kernel(%arg0: i32, %arg1: i32, %arg2: memref<1x4x2048xf32, #tpu.memory_space<vmem>>, %arg3: memref<1x4x2048xf32, #tpu.memory_space<vmem>>) attributes {dimension_semantics = [#tpu.dimension_semantics<parallel>, #tpu.dimension_semantics<parallel>], iteration_bounds = array<i64: 2, 1>, scalar_prefetch = 0 : i64, scratch_operands = 0 : i64, tpu.core_type = #tpu.core_type<tc>, window_params = [{transform_indices = @transform_0, window_bounds = array<i64: 1, 4, 2048>}, {transform_indices = @transform_1, window_bounds = array<i64: 1, 4, 2048>}]} {
    %c2048_i32 = arith.constant 2048 : i32
    %0 = arith.muli %arg1, %c2048_i32 : i32
    %c2048_i32_0 = arith.constant 2048 : i32
    %1 = arith.addi %0, %c2048_i32_0 : i32
    %c256_i32 = arith.constant 256 : i32
    %2 = arith.cmpi sle, %1, %c256_i32 : i32
    %c256_i32_1 = arith.constant 256 : i32
    %3 = arith.cmpi sge, %0, %c256_i32_1 : i32
    %4 = arith.extui %2 : i1 to i32
    %c0_i32 = arith.constant 0 : i32
    %5 = arith.cmpi ne, %4, %c0_i32 : i32
    scf.if %5 {
      %c0 = arith.constant 0 : index
      %c0_4 = arith.constant 0 : index
      %c0_5 = arith.constant 0 : index
      %12 = vector.load %arg2[%c0, %c0_4, %c0_5] : memref<1x4x2048xf32, #tpu.memory_space<vmem>>, vector<1x4x2048xf32>
      %13 = vector.shape_cast %12 : vector<1x4x2048xf32> to vector<4x2048xf32>
      %14 = vector.extract_strided_slice %13 {offsets = [1, 0], sizes = [3, 2048], strides = [1, 1]} : vector<4x2048xf32> to vector<3x2048xf32>
      %cst = arith.constant 0.000000e+00 : f32
      %15 = vector.broadcast %cst : f32 to vector<1x2048xf32>
      %16 = tpu.concatenate %14, %15 in 0 : vector<3x2048xf32>, vector<1x2048xf32> -> vector<4x2048xf32>
      %c0_6 = arith.constant 0 : index
      %c0_7 = arith.constant 0 : index
      %c0_8 = arith.constant 0 : index
      %17 = vector.load %arg3[%c0_6, %c0_7, %c0_8] : memref<1x4x2048xf32, #tpu.memory_space<vmem>>, vector<1x4x2048xf32>
      %18 = vector.shape_cast %17 : vector<1x4x2048xf32> to vector<4x2048xf32>
      %19 = vector.shape_cast %16 : vector<4x2048xf32> to vector<1x4x2048xf32>
      tpu.vector_store %arg3[%c0_6, %c0_7, %c0_8], %19 {strides = array<i32>} : memref<1x4x2048xf32, #tpu.memory_space<vmem>>, vector<1x4x2048xf32>,
    } else {
    }
    %6 = arith.extui %3 : i1 to i32
    %c0_i32_2 = arith.constant 0 : i32
    %7 = arith.cmpi ne, %6, %c0_i32_2 : i32
    scf.if %7 {
      %c0 = arith.constant 0 : index
      %c0_4 = arith.constant 0 : index
      %c0_5 = arith.constant 0 : index
      %12 = vector.load %arg2[%c0, %c0_4, %c0_5] : memref<1x4x2048xf32, #tpu.memory_space<vmem>>, vector<1x4x2048xf32>
      %13 = vector.shape_cast %12 : vector<1x4x2048xf32> to vector<4x2048xf32>
      %c0_6 = arith.constant 0 : index
      %c0_7 = arith.constant 0 : index
      %c0_8 = arith.constant 0 : index
      %14 = vector.load %arg3[%c0_6, %c0_7, %c0_8] : memref<1x4x2048xf32, #tpu.memory_space<vmem>>, vector<1x4x2048xf32>
      %15 = vector.shape_cast %14 : vector<1x4x2048xf32> to vector<4x2048xf32>
      %16 = vector.shape_cast %13 : vector<4x2048xf32> to vector<1x4x2048xf32>
      tpu.vector_store %arg3[%c0_6, %c0_7, %c0_8], %16 {strides = array<i32>} : memref<1x4x2048xf32, #tpu.memory_space<vmem>>, vector<1x4x2048xf32>,
    } else {
    }
    %8 = arith.ori %2, %3 : i1
    %true = arith.constant true
    %9 = arith.xori %8, %true : i1
    %10 = arith.extui %9 : i1 to i32
    %c0_i32_3 = arith.constant 0 : i32
    %11 = arith.cmpi ne, %10, %c0_i32_3 : i32
    scf.if %11 {
      %12 = tpu.iota {dimensions = array<i32: 1>} : vector<1x2048xi32>
      %13 = vector.broadcast %0 : i32 to vector<1x2048xi32>
      %14 = arith.addi %13, %12 : vector<1x2048xi32>
      %c256_i32_4 = arith.constant 256 : i32
      %15 = vector.broadcast %c256_i32_4 : i32 to vector<1x2048xi32>
      %16 = arith.cmpi slt, %14, %15 : vector<1x2048xi32>
      %c0 = arith.constant 0 : index
      %c0_5 = arith.constant 0 : index
      %c0_6 = arith.constant 0 : index
      %17 = vector.load %arg2[%c0, %c0_5, %c0_6] : memref<1x4x2048xf32, #tpu.memory_space<vmem>>, vector<1x4x2048xf32>
      %18 = vector.shape_cast %17 : vector<1x4x2048xf32> to vector<4x2048xf32>
      %19 = vector.extract_strided_slice %18 {offsets = [1, 0], sizes = [3, 2048], strides = [1, 1]} : vector<4x2048xf32> to vector<3x2048xf32>
      %cst = arith.constant 0.000000e+00 : f32
      %20 = vector.broadcast %cst : f32 to vector<1x2048xf32>
      %21 = tpu.concatenate %19, %20 in 0 : vector<3x2048xf32>, vector<1x2048xf32> -> vector<4x2048xf32>
      %22 = vector.shape_cast %16 : vector<1x2048xi1> to vector<1x2048xi1>
      %23 = vector.broadcast %22 : vector<1x2048xi1> to vector<4x2048xi1>
      %24 = arith.select %23, %21, %18 : vector<4x2048xi1>, vector<4x2048xf32>
      %c0_7 = arith.constant 0 : index
      %c0_8 = arith.constant 0 : index
      %c0_9 = arith.constant 0 : index
      %25 = vector.load %arg3[%c0_7, %c0_8, %c0_9] : memref<1x4x2048xf32, #tpu.memory_space<vmem>>, vector<1x4x2048xf32>
      %26 = vector.shape_cast %25 : vector<1x4x2048xf32> to vector<4x2048xf32>
      %27 = vector.shape_cast %24 : vector<4x2048xf32> to vector<1x4x2048xf32>
      tpu.vector_store %arg3[%c0_7, %c0_8, %c0_9], %27 {strides = array<i32>} : memref<1x4x2048xf32, #tpu.memory_space<vmem>>, vector<1x4x2048xf32>,
    } else {
    }
    return
  }
  func.func @transform_0(%arg0: i32, %arg1: i32) -> (i32, i32, i32) {
    %c0_i32 = arith.constant 0 : i32
    %c0_i32_0 = arith.constant 0 : i32
    return %arg0, %c0_i32, %arg1 : i32, i32, i32
  }
  func.func @transform_1(%arg0: i32, %arg1: i32) -> (i32, i32, i32) {
    %c0_i32 = arith.constant 0 : i32
    %c0_i32_0 = arith.constant 0 : i32
    return %arg0, %c0_i32, %arg1 : i32, i32, i32
  }
}

</mosaic_0001>

<bundles_post_ra>
// kernel: tpu_custom_call.1
= control target key start
LH: loop header
LB: loop body
LE: loop exit
PB: predicated region body
PF: predicated region fallthrough
CT: control target
= control target key end

     0   :  { %6 = vsyncpa [#allocation3], 0  ;;  %s1007_s0 = inlined_call_operand.hbm [shape: f32[2,4,2048], index: 0, kind: input, shape index: {}]   ;;  %s1008_s1 = inlined_call_operand.hbm [shape: f32[2,4,2048], index: 1, kind: output, shape index: {}]  }
   0x1   :  { %8 = vsyncpa [#allocation3 + $0x1], 0 }
   0x2   :  { %9 = vsyncpa [#allocation4], 0 }
   0x3   :  { %11 = vsyncpa [#allocation4 + $0x1], 0  ;;  %s829_s6 = smov 0   ;;  %s831_s7 = smov 0  }
   0x4   :  { %s833_s8 = smov 0   ;;  %s835_s9 = smov 0  }
   0x5   :  { %s837_s10 = smov 0   ;;  %s839_s11 = smov 0  }
   0x6 LB: > { %s616_s12 = sadd.s32 4294967295, %s815_s11   ;;  %s617_s13 = sadd.s32 4294967294, %s815_s11   ;;  %s815_s11 = sphi %s839_s11, %s17_s11   ;;  %s811_s10 = sphi %s837_s10, %s1024_s10   ;;  %s807_s9 = sphi %s835_s9, %s1023_s9   ;;  %s803_s8 = sphi %s833_s8, %s1022_s8   ;;  %s799_s7 = sphi %s831_s7, %s1021_s7   ;;  %s795_s6 = sphi %s829_s6, %s1020_s6  }
   0x7   : > { %s29_s14 = sadd.s32 1, %s811_s10  ;;  %s38_s15 = sadd.s32 1, %s803_s8 }
   0x8   : > { %p31_p0 = scmp.ge.s32.totalorder %s29_s14, 2  ;;  %p45_p1 = scmp.ne.s32.totalorder %s803_s8, %s799_s7 }
   0x9   : > { %p46_p2 = scmp.eq.s32.totalorder %s815_s11, 0  ;;  %p51_p3 = scmp.ne.s32.totalorder %s799_s7, %s795_s6 }
   0xa   : > { %s1026_s14 = smov (%p31_p0, %s29_s14), 0  ;;  %p52_p5 = scmp.eq.s32.totalorder %s616_s12, 0 }
   0xb   : > { %p870_p4 = por %p46_p2, %p45_p1  ;;  %s33_s17 = ssub.s32 %s811_s10, %s1026_s14 }
   0xc   : > { %p77_p6 = scmp.eq.s32.totalorder %s616_s12, 1  ;;  %p36_p7 = scmp.eq.s32.totalorder %s33_s17, 0 }
   0xd   : > { %p876_p8 = por %p52_p5, %p51_p3  ;;  %p83_p10 = scmp.eq.s32.totalorder %s617_s13, 1 }
   0xe   : > { %p880_p9 = por %p77_p6, %p45_p1  ;;  %p645_p13 = scmp.lt.s32.totalorder %s815_s11, 2 }
   0xf   : > { %s885_s20 = scalar_select %p36_p7, %s803_s8, %s38_s15  }
  0x10   : > { %s1012_s19 = scalar_select %p880_p9, 1, 0 }
  0x11   : > { %p887_p11 = por %p83_p10, %p51_p3  ;;  %s103_s22 = sand.u32 1, %s803_s8  }
  0x12   : > { %s620_s23 = sshll.u32 %s103_s22, 6  ;;  %s631_s24 = sshll.u32 %s811_s10, 10 }
  0x13   : > { %s1013_s21 = scalar_select %p887_p11, 1, 0 }
  0x14   : > { %s898_s27 = scalar_lea.hbm %s1007_s0, %s631_s24  ;;  %s107_s28 = scalar_lea.vmem [#allocation2], %s620_s23 }
  0x15   : > { %s117_s29 = sshll.u32 %s107_s28, 4  ;;  %p904_p0 = pnand %p645_p13, %p870_p4  ;;  %s900_s29 = int_to_ptr.vmem [resolvable:$true] %s117_s29 }
  0x16   : > { %s104_s2 = scalar_lea.sflag [#allocation3], %s103_s22  ;;  %s703_s3 = scalar_lea.hbm %s898_s27, 1024 }
  0x17   : > { %p704_p3 = scmp.ne.s32.totalorder %s898_s27, %s703_s3  ;;  %p705_p5 = pneg %p904_p0 }
  0x18   : > { %s708_s12 = scalar_lea.hbm %s1007_s0, 2048  ;;  %p709_p4 = scmp.lt.u32.totalorder %s898_s27, %s1007_s0 }
  0x19   : > { %p706_p6 = pnand %p705_p5, %p704_p3  ;;  %p710_p10 = scmp.lt.u32.totalorder %s708_s12, %s703_s3 }
  0x1a   : > { %p712_p12 = scmp.lt.u32.totalorder %s703_s3, %s898_s27 }
  0x1b   : > { %p707_p7 = pneg %p706_p6  ;;  %p711_p13 = por %p710_p10, %p709_p4 }
  0x1d   : > { %p713_p1 = por %p712_p12, %p711_p13 }
  0x1f   : > { %p714_p2 = pnand %p713_p1, %p707_p7 }
  0x21   : > { %717 = shalt.err (!%p714_p2)
}
  0x22   : > { %s718_s16 = scalar_lea.vmem %s900_s29, 1024  ;;  %s817_s17 = smov [#allocation2]  }
  0x23   : > { %p719_p3 = scmp.ne.s32.totalorder %s900_s29, %s718_s16  ;;  %s723_s22 = sshll.u32 %s817_s17, 4  ;;  %s724_s22 = int_to_ptr.vmem [resolvable:$false] %s723_s22 }
  0x24   : > { %s725_s23 = scalar_lea.vmem %s724_s22, 2048  ;;  %p726_p9 = scmp.lt.s32.totalorder %s900_s29, %s724_s22 }
  0x25   : > { %p721_p6 = pnand %p719_p3, %p705_p5  ;;  %p727_p4 = scmp.lt.s32.totalorder %s725_s23, %s718_s16 }
  0x27   : > { %p722_p11 = pneg %p721_p6  ;;  %p728_p10 = por %p727_p4, %p726_p9 }
  0x29   : > { %p729_p12 = pnand %p728_p10, %p722_p11 }
  0x2b   : > { %732 = shalt.err (!%p729_p12)
}
  0x2c   : > { %640 = dma.hbm_to_vmem [thread:$0]  (!%p904_p0), %s898_s27, 1024, %s900_s29, %s104_s2  }
  0x2d   : > { %p1015_p1 = scmp.lt.s32.totalorder %s815_s11, 3  ;;  %p1016_p2 = scmp.ge.s32.totalorder %s815_s11, 1 }
  0x2f   : > { %p123_p5 = pnand %p1016_p2, %p1015_p1 }
  0x30   : > { %s940_s24 = sand.u32 (!%p123_p5), 1, %s799_s7  }
  0x31   : > { %126 = sbr.rel (%p123_p5) target bundleno = 83 (0x53), region = 24  ;;  %s624_s25 = sshll.u32 (!%p123_p5), %s940_s24, 6 }
  0x32   : > { %s129_s26 = scalar_lea.sflag (!%p123_p5), [#allocation3], %s940_s24  ;;  %s132_s28 = scalar_lea.vmem (!%p123_p5), [#allocation2], %s624_s25 }
  0x38   : > { %786 = dma.done.wait (%p876_p8), %s129_s26, 1024  }
  0x39   : > { %788 = vsyncadd (%p876_p8), %s129_s26, 4294966272  ;;  %v346_v0 = vld [vmem:[%s132_s28] sm:$0xff]  ;;  %vm402_vm0 = vcmask 1042432   ;;  %v347_v1 = vld [vmem:[%s132_s28 + $0x8] sm:$0xff]  ;;  %s632_s18 = sshll.u32 %s807_s9, 10  ;;  %s150_s27 = scalar_lea.vmem [#allocation5], %s624_s25 }
  0x3a   : > { %v348_v2 = vld [vmem:[%s132_s28 + $0x10] sm:$0xff]  ;;  %v362_v3 = vcombine.high %v346_v0, %v346_v0  ;;  %v370_v4 = vrot.slane %v346_v0, 1  ;;  %v363_v5 = vcombine.high %v347_v1, %v347_v1  ;;  %v349_v7 = vld [vmem:[%s132_s28 + $0x18] sm:$0xff]  ;;  %v350_v8 = vld [vmem:[%s132_s28 + $0x20] sm:$0xff]  ;;  %s532_s29 = sshll.u32 %s150_s27, 4  ;;  %s958_s9 = scalar_lea.hbm %s1008_s1, %s632_s18  ;;  %s960_s29 = int_to_ptr.vmem [resolvable:$true] %s532_s29 }
  0x3b   : > { %v364_v6 = vcombine.high %v348_v2, %v348_v2  ;;  %v351_v9 = vld [vmem:[%s132_s28 + $0x28] sm:$0xff]  ;;  %v365_v10 = vcombine.high %v349_v7, %v349_v7  ;;  %v366_v11 = vcombine.high %v350_v8, %v350_v8  ;;  %v352_v13 = vld [vmem:[%s132_s28 + $0x30] sm:$0xff]  ;;  %v353_v14 = vld [vmem:[%s132_s28 + $0x38] sm:$0xff]  ;;  %s516_s3 = scalar_lea.sflag [#allocation4], %s940_s24  ;;  %s733_s4 = scalar_lea.vmem %s960_s29, 1024 }
  0x3c   : > { %v367_v12 = vcombine.high %v351_v9, %v351_v9  ;;  %v371_v15 = vrot.slane %v362_v3, 1  ;;  %v403_v16 = vsel %vm402_vm0, %v370_v4, 0.0  ;;  %v492_v17 = vcombine.low %v347_v1, %v363_v5  ;;  %p734_p8 = scmp.ne.s32.totalorder %s960_s29, %s733_s4  ;;  %p1017_p9 = scmp.ne.s32.totalorder %s1012_s19, 0 }
  0x3d   : > { %v493_v18 = vcombine.low %v348_v2, %v364_v6  ;;  %v494_v19 = vcombine.low %v349_v7, %v365_v10  ;;  %v495_v20 = vcombine.low %v350_v8, %v366_v11  ;;  %v368_v22 = vcombine.high %v352_v13, %v352_v13  ;;  %s818_s5 = smov [#allocation5]  }
  0x3e   : > { %v496_v21 = vcombine.low %v351_v9, %v367_v12  ;;  %v404_v23 = vsel %vm402_vm0, %v371_v15, 0.0  ;;  %508 = vst [vmem:[%s150_s27 + $0x8] sm:$0xff] %v492_v17  ;;  %v369_v24 = vcombine.high %v353_v14, %v353_v14  ;;  %p735_p11 = pnand %p734_p8, %p1017_p9  ;;  %s737_s12 = sshll.u32 %s818_s5, 4  ;;  %s738_s12 = int_to_ptr.vmem [resolvable:$false] %s737_s12 }
  0x3f   : > { %509 = vst [vmem:[%s150_s27 + $0x10] sm:$0xff] %v493_v18  ;;  %v491_v25 = vcombine.low %v403_v16, %v404_v23  ;;  %510 = vst [vmem:[%s150_s27 + $0x18] sm:$0xff] %v494_v19  ;;  %v497_v26 = vcombine.low %v352_v13, %v368_v22  ;;  %s739_s13 = scalar_lea.vmem %s738_s12, 2048  ;;  %p740_p7 = scmp.lt.s32.totalorder %s960_s29, %s738_s12 }
  0x40   : > { %511 = vst [vmem:[%s150_s27 + $0x20] sm:$0xff] %v495_v20  ;;  %512 = vst [vmem:[%s150_s27 + $0x28] sm:$0xff] %v496_v21  ;;  %v498_v27 = vcombine.low %v353_v14, %v369_v24  ;;  %p736_p0 = pneg %p735_p11  ;;  %p741_p13 = scmp.lt.s32.totalorder %s739_s13, %s733_s4 }
  0x41   : > { %507 = vst [vmem:[%s150_s27] sm:$0xff] %v491_v25  ;;  %513 = vst [vmem:[%s150_s27 + $0x30] sm:$0xff] %v497_v26 }
  0x42   : > { %514 = vst [vmem:[%s150_s27 + $0x38] sm:$0xff] %v498_v27  ;;  %p742_p3 = por %p741_p13, %p740_p7 }
  0x44   : > { %p743_p6 = pnand %p742_p3, %p736_p0 }
  0x46   : > { %746 = shalt.err (!%p743_p6)
}
  0x47   : > { %s747_s15 = scalar_lea.hbm %s958_s9, 1024  ;;  %s751_s22 = scalar_lea.hbm %s1008_s1, 2048 }
  0x48   : > { %p748_p4 = scmp.ne.s32.totalorder %s958_s9, %s747_s15  ;;  %p752_p1 = scmp.lt.u32.totalorder %s958_s9, %s1008_s1 }
  0x49   : > { %p753_p2 = scmp.lt.u32.totalorder %s751_s22, %s747_s15  ;;  %p755_p8 = scmp.lt.u32.totalorder %s747_s15, %s958_s9 }
  0x4a   : > { %p749_p10 = pnand %p748_p4, %p1017_p9 }
  0x4b   : > { %p754_p5 = por %p753_p2, %p752_p1 }
  0x4c   : > { %p750_p12 = pneg %p749_p10 }
  0x4d   : > { %p756_p11 = por %p755_p8, %p754_p5 }
  0x4f   : > { %p757_p0 = pnand %p756_p11, %p750_p12 }
  0x51   : > { %760 = shalt.err (!%p757_p0)
}
  0x52   : > { %635 = dma.vmem_to_hbm [thread:$0]  (%p1017_p9), %s960_s29, 1024, %s958_s9, %s516_s3  }
  0x53 PF: > { %s544_s25 = sand.u32 1, %s795_s6   ;;  %p1018_p7 = scmp.ne.s32.totalorder %s1013_s21, 0 }
  0x54   : > { %p1019_p13 = scmp.ge.s32.totalorder %s815_s11, 2  ;;  %s545_s26 = scalar_lea.sflag [#allocation4], %s544_s25 }
  0x56   : > { %p642_p3 = pnand %p1019_p13, %p1018_p7 }
  0x58   : > { %790 = dma.done.wait (!%p642_p3), %s545_s26, 1024  }
  0x59   : > { %792 = vsyncadd (!%p642_p3), %s545_s26, 4294966272  ;;  %s17_s11 = sadd.s32 1, %s815_s11   ;;  %s1020_s6 = smov %s799_s7 }
  0x5a   : > { %p14_p6 = scmp.ge.s32.totalorder %s17_s11, 4   ;;  %s1021_s7 = smov %s803_s8 }
  0x5b   : > { %s1022_s8 = smov %s885_s20  ;;  %s1023_s9 = smov %s811_s10 }
  0x5c   : > { %s1024_s10 = smov %s1026_s14  ;;  %16 = sbr.rel (!%p14_p6) target bundleno = 6 (0x6), region = 81 }
  0x63   :  { %550 = vsyncpa [#allocation3], 1 }
  0x64   :  { %552 = vsyncpa [#allocation3 + $0x1], 1 }
  0x65   :  { %553 = vsyncpa [#allocation4], 1 }
  0x66   :  { %555 = vsyncpa [#allocation4 + $0x1], 1 }

</bundles_post_ra>
